<compile_context>
chip_gen: v6e
topology: v6e:2x2x1
jax: 0.10.0
libtpu: 0.0.40
codegen_flags: <defaults>
</compile_context>

<pallas_src>
import functools
import math

import jax
import jax.numpy as jnp
import numpy as np
from jax.experimental import pallas as pl
from jax.experimental.pallas import tpu as pltpu

_LANE_TARGET = 512                      # target packed lane width (row-group * D)
_TARGET_BLOCK_BYTES = 2 << 20           # ~2 MiB streamed per input per grid step
_VMEM_LIMIT_BYTES = 32 * 1024 * 1024    # safe on v5e/v6e (128 MiB) and v7x (64 MiB)
_NUM_CORE_SPLITS = 2                    # v7x has 2 TCs; extra group is cheap on 1-TC chips
_EPS = 1e-8


def _cdiv(a, b):
    return (a + b - 1) // b


def _round_up(a, b):
    return _cdiv(a, b) * b


def _concat_if_list(x):
    if isinstance(x, (list, tuple)):
        return jnp.concatenate([jnp.asarray(v) for v in x], axis=0)
    return jnp.asarray(x)


def _sublane_multiple(dtype):
    # Native sublane packing: 8 rows for 4-byte, 16 for 2-byte, 32 for 1-byte dtypes.
    return max(8, 32 // np.dtype(dtype).itemsize)


def _pearson_stats_kernel(x_ref, y_ref, pvx_ref, pvy_ref,
                          sx_ref, sy_ref, sxx_ref, syy_ref, sxy_ref,
                          *, blocks_per_core, block_rows, total_rows):
    p = pl.program_id(0)          # core-split axis ("parallel")
    j = pl.program_id(1)          # streaming reduction axis ("arbitrary")

    @pl.when(j == 0)
    def _init():
        for ref in (sx_ref, sy_ref, sxx_ref, syy_ref, sxy_ref):
            ref[...] = jnp.zeros_like(ref)

    x = x_ref[...].astype(jnp.float32)
    y = y_ref[...].astype(jnp.float32)
    pvx = pvx_ref[...]            # (1, c) pivot rows, broadcast over sublanes
    pvy = pvy_ref[...]

    def accumulate(xs, ys):
        # Lane-wise partial sums; reduction only over the sublane axis.
        sx_ref[...] += jnp.sum(xs, axis=0, keepdims=True)[None]
        sy_ref[...] += jnp.sum(ys, axis=0, keepdims=True)[None]
        sxx_ref[...] += jnp.sum(xs * xs, axis=0, keepdims=True)[None]
        syy_ref[...] += jnp.sum(ys * ys, axis=0, keepdims=True)[None]
        sxy_ref[...] += jnp.sum(xs * ys, axis=0, keepdims=True)[None]

    b = p * blocks_per_core + j               # logical row-block index
    valid = total_rows - b * block_rows       # rows of this block holding real data

    @pl.when(valid >= block_rows)             # full block: no masking needed
    def _full():
        accumulate(x - pvx, y - pvy)

    @pl.when(valid < block_rows)              # ragged / empty tail: mask stale rows
    def _partial():
        rows = jax.lax.broadcasted_iota(jnp.int32, x.shape, 0)
        m = rows < valid
        accumulate(jnp.where(m, x - pvx, 0.0), jnp.where(m, y - pvy, 0.0))


def pearson_r(preds, targets, *, block_bytes=_TARGET_BLOCK_BYTES):
    """PearsonR().forward(preds, targets) — returns a scalar float32."""
    preds = _concat_if_list(preds)
    targets = _concat_if_list(targets)

    n = preds.shape[0]
    d = 1
    for s in preds.shape[1:]:
        d *= s
    x = preds.reshape(n, d)
    y = targets.reshape(n, d)

    # ---- Packing geometry: fold g consecutive samples into the lane axis -------------
    g = max(1, min(_LANE_TARGET // d, n)) if d > 0 else 1
    step = 128 // math.gcd(d, 128)
    if step <= g:
        g = (g // step) * step          # keep c = g*d a multiple of 128 (unmasked lanes)
    c = g * d

    r_rows = n // g                     # full packed rows streamed by the kernel
    n_main = r_rows * g
    n_rem = n - n_main                  # < g leftover samples folded in plain JAX below

    # Pivot (Pearson r is shift-invariant): subtract the first sample per column before
    # accumulation to avoid cancellation of sum(x^2) - n*mean^2 when |mean| >> std.
    pvx_d = x[0].astype(jnp.float32).reshape(d)
    pvy_d = y[0].astype(jnp.float32).reshape(d)
    pvx = jnp.tile(pvx_d, g).reshape(1, c)   # packed lane l corresponds to column l % d
    pvy = jnp.tile(pvy_d, g).reshape(1, c)

    # No zero-pad concatenate: the bulk is a free row-major reshape.  Only when g does
    # not divide n do we slice (cheap relative to the old full pad+copy) and handle the
    # tiny tail outside the kernel.
    if n_rem:
        x_main, y_main = x[:n_main], y[:n_main]
    else:
        x_main, y_main = x, y
    x2 = x_main.reshape(r_rows, c)
    y2 = y_main.reshape(r_rows, c)

    # ---- Block / grid geometry (dtype-aware sublane rounding, ~2 MiB per input) ------
    sub = max(_sublane_multiple(x.dtype), _sublane_multiple(y.dtype))
    item = max(np.dtype(x.dtype).itemsize, np.dtype(y.dtype).itemsize)
    tr_cap = max(sub, (block_bytes // (c * item)) // sub * sub)
    if r_rows <= tr_cap:
        tr = r_rows                     # single whole-extent block along rows
    else:
        tr = tr_cap                     # multiple of the sublane packing
    n_blocks = _cdiv(r_rows, tr)

    # Split the stream across TensorCores (2 on v7x); each core owns its accumulator row.
    num_cores = _NUM_CORE_SPLITS if n_blocks >= _NUM_CORE_SPLITS else 1
    bpc = _cdiv(n_blocks, num_cores)

    def stream_map(p, j):
        # Clamp: a core's trailing logical block may fall past the end; re-reading the
        # final real block is harmless because the kernel masks it to zero contribution.
        return (jnp.minimum(p * bpc + j, n_blocks - 1), 0)

    kernel = functools.partial(
        _pearson_stats_kernel,
        blocks_per_core=bpc, block_rows=tr, total_rows=r_rows)

    out_shape = tuple(jax.ShapeDtypeStruct((num_cores, 1, c), jnp.float32)
                      for _ in range(5))
    out_specs = tuple(pl.BlockSpec((1, 1, c), lambda p, j: (p, 0, 0)) for _ in range(5))

    stats = pl.pallas_call(
        kernel,
        out_shape=out_shape,
        grid_spec=pltpu.PrefetchScalarGridSpec(
            num_scalar_prefetch=0,
            grid=(num_cores, bpc),
            in_specs=[
                pl.BlockSpec((tr, c), stream_map),
                pl.BlockSpec((tr, c), stream_map),
                pl.BlockSpec((1, c), lambda p, j: (0, 0)),
                pl.BlockSpec((1, c), lambda p, j: (0, 0)),
            ],
            out_specs=out_specs,
        ),
        compiler_params=pltpu.CompilerParams(
            dimension_semantics=("parallel", "arbitrary"),
            vmem_limit_bytes=_VMEM_LIMIT_BYTES,
        ),
    )(x2, y2, pvx, pvy)

    # ---- O(d) finalize in plain JAX ---------------------------------------------------
    # Fold per-core rows and per-lane partials back to per-column sums (lane l <-> col l%d).
    sx, sy, sxx, syy, sxy = [s.sum(axis=(0, 1)).reshape(g, d).sum(axis=0) for s in stats]

    if n_rem:
        xr = x[n_main:].astype(jnp.float32) - pvx_d
        yr = y[n_main:].astype(jnp.float32) - pvy_d
        sx = sx + xr.sum(axis=0)
        sy = sy + yr.sum(axis=0)
        sxx = sxx + (xr * xr).sum(axis=0)
        syy = syy + (yr * yr).sum(axis=0)
        sxy = sxy + (xr * yr).sum(axis=0)

    nf = jnp.float32(n)
    mean_x = sx / nf                                        # means of pivot-shifted data
    mean_y = sy / nf
    var_x = jnp.maximum(sxx - nf * mean_x * mean_x, 0.0)    # = sum((x - mean_x)^2)
    var_y = jnp.maximum(syy - nf * mean_y * mean_y, 0.0)
    cov = sxy - nf * mean_x * mean_y                        # = sum(shifted_x * shifted_y)
    pearson = cov / (jnp.sqrt(var_x) * jnp.sqrt(var_y) + _EPS)
    pearson = jnp.clip(pearson, -1.0, 1.0)
    return pearson.mean()


def _pearson_ref(preds, targets):
    """float64 numpy reference (exact two-pass formula)."""
    p = np.asarray(jnp.asarray(preds, jnp.float32)).astype(np.float64)
    t = np.asarray(jnp.asarray(targets, jnp.float32)).astype(np.float64)
    p = p.reshape(p.shape[0], -1)
    t = t.reshape(t.shape[0], -1)
    sx = p - p.mean(axis=0)
    sy = t - t.mean(axis=0)
    sig_x = np.sqrt((sx ** 2).sum(axis=0))
    sig_y = np.sqrt((sy ** 2).sum(axis=0))
    r = (sx * sy).sum(axis=0) / (sig_x * sig_y + _EPS)
    return float(np.clip(r, -1.0, 1.0).mean())


if __name__ == "__main__":
    root = jax.random.PRNGKey(0)

    def make_pair(key, shape, dtype=jnp.float32, offset=0.0):
        k1, k2 = jax.random.split(key)
        t = jax.random.normal(k2, shape, dtype=jnp.float32)
        p = 0.8 * t + 0.6 * jax.random.normal(k1, shape, dtype=jnp.float32)
        return (p + offset).astype(dtype), (t + offset).astype(dtype)

    cases = [
        ("basic_256x4", dict(shape=(256, 4))),
        ("qm9_offset_2500x3", dict(shape=(2500, 3), offset=400.0)),      # g-remainder + pivot stress
        ("multicore_8960x4", dict(shape=(8960, 4), block_bytes=64 * 1024)),  # multi-block, 2-core split
        ("bf16_1000x8", dict(shape=(1000, 8), dtype=jnp.bfloat16)),
        ("vector_300", dict(shape=(300,))),
    ]

    keys = jax.random.split(root, len(cases))
    for (name, cfg), k in zip(cases, keys):
        preds, targets = make_pair(k, cfg["shape"], cfg.get("dtype", jnp.float32),
                                   cfg.get("offset", 0.0))
        out = jax.block_until_ready(
            pearson_r(preds, targets,
                      block_bytes=cfg.get("block_bytes", _TARGET_BLOCK_BYTES)))
        ref = _pearson_ref(preds, targets)
        assert abs(float(out) - ref) < 5e-4, (name, float(out), ref)

    # list-of-tensors input path (concat_if_list semantics of the PyTorch module)
    preds, targets = make_pair(keys[0], (256, 4))
    out_list = jax.block_until_ready(
        pearson_r([preds[:100], preds[100:]], [targets[:100], targets[100:]]))
    out_full = jax.block_until_ready(pearson_r(preds, targets))
    assert abs(float(out_list) - float(out_full)) < 1e-6, (float(out_list), float(out_full))

    print("KERNEL_OK")
</pallas_src>

<mosaic_0001>
module attributes {stable_mosaic.version = 11 : i64} {
  func.func @_pearson_stats_kernel(%arg0: i32, %arg1: i32, %arg2: memref<2x512xf32, #tpu.memory_space<vmem>>, %arg3: memref<2x512xf32, #tpu.memory_space<vmem>>, %arg4: memref<1x512xf32, #tpu.memory_space<vmem>>, %arg5: memref<1x512xf32, #tpu.memory_space<vmem>>, %arg6: memref<1x1x512xf32, #tpu.memory_space<vmem>>, %arg7: memref<1x1x512xf32, #tpu.memory_space<vmem>>, %arg8: memref<1x1x512xf32, #tpu.memory_space<vmem>>, %arg9: memref<1x1x512xf32, #tpu.memory_space<vmem>>, %arg10: memref<1x1x512xf32, #tpu.memory_space<vmem>>) attributes {dimension_semantics = [#tpu.dimension_semantics<parallel>, #tpu.dimension_semantics<arbitrary>], iteration_bounds = array<i64: 1, 1>, scalar_prefetch = 0 : i64, scratch_operands = 0 : i64, tpu.core_type = #tpu.core_type<tc>, window_params = [{transform_indices = @transform_0, window_bounds = array<i64: 2, 512>}, {transform_indices = @transform_1, window_bounds = array<i64: 2, 512>}, {pipeline_mode = #tpu.pipeline_mode<synchronous>, transform_indices = @transform_2, window_bounds = array<i64: 1, 512>}, {pipeline_mode = #tpu.pipeline_mode<synchronous>, transform_indices = @transform_3, window_bounds = array<i64: 1, 512>}, {transform_indices = @transform_4, window_bounds = array<i64: 1, 1, 512>}, {transform_indices = @transform_5, window_bounds = array<i64: 1, 1, 512>}, {transform_indices = @transform_6, window_bounds = array<i64: 1, 1, 512>}, {transform_indices = @transform_7, window_bounds = array<i64: 1, 1, 512>}, {transform_indices = @transform_8, window_bounds = array<i64: 1, 1, 512>}]} {
    %c0_i32 = arith.constant 0 : i32
    %0 = arith.cmpi eq, %arg1, %c0_i32 : i32
    %1 = arith.extui %0 : i1 to i32
    %c0_i32_0 = arith.constant 0 : i32
    %2 = arith.cmpi ne, %1, %c0_i32_0 : i32
    scf.if %2 {
      %cst = arith.constant 0.000000e+00 : f32
      %17 = vector.broadcast %cst : f32 to vector<1x1x512xf32>
      %c0_13 = arith.constant 0 : index
      %c0_14 = arith.constant 0 : index
      %c0_15 = arith.constant 0 : index
      %18 = vector.load %arg6[%c0_13, %c0_14, %c0_15] : memref<1x1x512xf32, #tpu.memory_space<vmem>>, vector<1x1x512xf32>
      tpu.vector_store %arg6[%c0_13, %c0_14, %c0_15], %17 {strides = array<i32>} : memref<1x1x512xf32, #tpu.memory_space<vmem>>, vector<1x1x512xf32>,
      %cst_16 = arith.constant 0.000000e+00 : f32
      %19 = vector.broadcast %cst_16 : f32 to vector<1x1x512xf32>
      %c0_17 = arith.constant 0 : index
      %c0_18 = arith.constant 0 : index
      %c0_19 = arith.constant 0 : index
      %20 = vector.load %arg7[%c0_17, %c0_18, %c0_19] : memref<1x1x512xf32, #tpu.memory_space<vmem>>, vector<1x1x512xf32>
      tpu.vector_store %arg7[%c0_17, %c0_18, %c0_19], %19 {strides = array<i32>} : memref<1x1x512xf32, #tpu.memory_space<vmem>>, vector<1x1x512xf32>,
      %cst_20 = arith.constant 0.000000e+00 : f32
      %21 = vector.broadcast %cst_20 : f32 to vector<1x1x512xf32>
      %c0_21 = arith.constant 0 : index
      %c0_22 = arith.constant 0 : index
      %c0_23 = arith.constant 0 : index
      %22 = vector.load %arg8[%c0_21, %c0_22, %c0_23] : memref<1x1x512xf32, #tpu.memory_space<vmem>>, vector<1x1x512xf32>
      tpu.vector_store %arg8[%c0_21, %c0_22, %c0_23], %21 {strides = array<i32>} : memref<1x1x512xf32, #tpu.memory_space<vmem>>, vector<1x1x512xf32>,
      %cst_24 = arith.constant 0.000000e+00 : f32
      %23 = vector.broadcast %cst_24 : f32 to vector<1x1x512xf32>
      %c0_25 = arith.constant 0 : index
      %c0_26 = arith.constant 0 : index
      %c0_27 = arith.constant 0 : index
      %24 = vector.load %arg9[%c0_25, %c0_26, %c0_27] : memref<1x1x512xf32, #tpu.memory_space<vmem>>, vector<1x1x512xf32>
      tpu.vector_store %arg9[%c0_25, %c0_26, %c0_27], %23 {strides = array<i32>} : memref<1x1x512xf32, #tpu.memory_space<vmem>>, vector<1x1x512xf32>,
      %cst_28 = arith.constant 0.000000e+00 : f32
      %25 = vector.broadcast %cst_28 : f32 to vector<1x1x512xf32>
      %c0_29 = arith.constant 0 : index
      %c0_30 = arith.constant 0 : index
      %c0_31 = arith.constant 0 : index
      %26 = vector.load %arg10[%c0_29, %c0_30, %c0_31] : memref<1x1x512xf32, #tpu.memory_space<vmem>>, vector<1x1x512xf32>
      tpu.vector_store %arg10[%c0_29, %c0_30, %c0_31], %25 {strides = array<i32>} : memref<1x1x512xf32, #tpu.memory_space<vmem>>, vector<1x1x512xf32>,
    } else {
    }
    %c0 = arith.constant 0 : index
    %c0_1 = arith.constant 0 : index
    %3 = vector.load %arg2[%c0, %c0_1] : memref<2x512xf32, #tpu.memory_space<vmem>>, vector<2x512xf32>
    %c0_2 = arith.constant 0 : index
    %c0_3 = arith.constant 0 : index
    %4 = vector.load %arg3[%c0_2, %c0_3] : memref<2x512xf32, #tpu.memory_space<vmem>>, vector<2x512xf32>
    %c0_4 = arith.constant 0 : index
    %c0_5 = arith.constant 0 : index
    %5 = vector.load %arg4[%c0_4, %c0_5] : memref<1x512xf32, #tpu.memory_space<vmem>>, vector<1x512xf32>
    %c0_6 = arith.constant 0 : index
    %c0_7 = arith.constant 0 : index
    %6 = vector.load %arg5[%c0_6, %c0_7] : memref<1x512xf32, #tpu.memory_space<vmem>>, vector<1x512xf32>
    %c1_i32 = arith.constant 1 : i32
    %7 = arith.muli %arg0, %c1_i32 : i32
    %8 = arith.addi %7, %arg1 : i32
    %c2_i32 = arith.constant 2 : i32
    %9 = arith.muli %8, %c2_i32 : i32
    %c2_i32_8 = arith.constant 2 : i32
    %10 = arith.subi %c2_i32_8, %9 : i32
    %c2_i32_9 = arith.constant 2 : i32
    %11 = arith.cmpi sge, %10, %c2_i32_9 : i32
    %12 = arith.extui %11 : i1 to i32
    %c0_i32_10 = arith.constant 0 : i32
    %13 = arith.cmpi ne, %12, %c0_i32_10 : i32
    scf.if %13 {
      %17 = vector.broadcast %5 : vector<1x512xf32> to vector<2x512xf32>
      %18 = arith.subf %3, %17 : vector<2x512xf32>
      %19 = vector.broadcast %6 : vector<1x512xf32> to vector<2x512xf32>
      %20 = arith.subf %4, %19 : vector<2x512xf32>
      %c0_13 = arith.constant 0 : index
      %c0_14 = arith.constant 0 : index
      %c0_15 = arith.constant 0 : index
      %21 = vector.load %arg6[%c0_13, %c0_14, %c0_15] : memref<1x1x512xf32, #tpu.memory_space<vmem>>, vector<1x1x512xf32>
      %cst = arith.constant dense<0.000000e+00> : vector<512xf32>
      %22 = vector.multi_reduction <add>, %18, %cst [0] : vector<2x512xf32> to vector<512xf32>
      %23 = vector.shape_cast %22 : vector<512xf32> to vector<1x512xf32>
      %24 = vector.shape_cast %23 : vector<1x512xf32> to vector<1x1x512xf32>
      %25 = arith.addf %21, %24 : vector<1x1x512xf32>
      %c0_16 = arith.constant 0 : index
      %c0_17 = arith.constant 0 : index
      %c0_18 = arith.constant 0 : index
      %26 = vector.load %arg6[%c0_16, %c0_17, %c0_18] : memref<1x1x512xf32, #tpu.memory_space<vmem>>, vector<1x1x512xf32>
      tpu.vector_store %arg6[%c0_16, %c0_17, %c0_18], %25 {strides = array<i32>} : memref<1x1x512xf32, #tpu.memory_space<vmem>>, vector<1x1x512xf32>,
      %c0_19 = arith.constant 0 : index
      %c0_20 = arith.constant 0 : index
      %c0_21 = arith.constant 0 : index
      %27 = vector.load %arg7[%c0_19, %c0_20, %c0_21] : memref<1x1x512xf32, #tpu.memory_space<vmem>>, vector<1x1x512xf32>
      %cst_22 = arith.constant dense<0.000000e+00> : vector<512xf32>
      %28 = vector.multi_reduction <add>, %20, %cst_22 [0] : vector<2x512xf32> to vector<512xf32>
      %29 = vector.shape_cast %28 : vector<512xf32> to vector<1x512xf32>
      %30 = vector.shape_cast %29 : vector<1x512xf32> to vector<1x1x512xf32>
      %31 = arith.addf %27, %30 : vector<1x1x512xf32>
      %c0_23 = arith.constant 0 : index
      %c0_24 = arith.constant 0 : index
      %c0_25 = arith.constant 0 : index
      %32 = vector.load %arg7[%c0_23, %c0_24, %c0_25] : memref<1x1x512xf32, #tpu.memory_space<vmem>>, vector<1x1x512xf32>
      tpu.vector_store %arg7[%c0_23, %c0_24, %c0_25], %31 {strides = array<i32>} : memref<1x1x512xf32, #tpu.memory_space<vmem>>, vector<1x1x512xf32>,
      %c0_26 = arith.constant 0 : index
      %c0_27 = arith.constant 0 : index
      %c0_28 = arith.constant 0 : index
      %33 = vector.load %arg8[%c0_26, %c0_27, %c0_28] : memref<1x1x512xf32, #tpu.memory_space<vmem>>, vector<1x1x512xf32>
      %34 = arith.mulf %18, %18 : vector<2x512xf32>
      %cst_29 = arith.constant dense<0.000000e+00> : vector<512xf32>
      %35 = vector.multi_reduction <add>, %34, %cst_29 [0] : vector<2x512xf32> to vector<512xf32>
      %36 = vector.shape_cast %35 : vector<512xf32> to vector<1x512xf32>
      %37 = vector.shape_cast %36 : vector<1x512xf32> to vector<1x1x512xf32>
      %38 = arith.addf %33, %37 : vector<1x1x512xf32>
      %c0_30 = arith.constant 0 : index
      %c0_31 = arith.constant 0 : index
      %c0_32 = arith.constant 0 : index
      %39 = vector.load %arg8[%c0_30, %c0_31, %c0_32] : memref<1x1x512xf32, #tpu.memory_space<vmem>>, vector<1x1x512xf32>
      tpu.vector_store %arg8[%c0_30, %c0_31, %c0_32], %38 {strides = array<i32>} : memref<1x1x512xf32, #tpu.memory_space<vmem>>, vector<1x1x512xf32>,
      %c0_33 = arith.constant 0 : index
      %c0_34 = arith.constant 0 : index
      %c0_35 = arith.constant 0 : index
      %40 = vector.load %arg9[%c0_33, %c0_34, %c0_35] : memref<1x1x512xf32, #tpu.memory_space<vmem>>, vector<1x1x512xf32>
      %41 = arith.mulf %20, %20 : vector<2x512xf32>
      %cst_36 = arith.constant dense<0.000000e+00> : vector<512xf32>
      %42 = vector.multi_reduction <add>, %41, %cst_36 [0] : vector<2x512xf32> to vector<512xf32>
      %43 = vector.shape_cast %42 : vector<512xf32> to vector<1x512xf32>
      %44 = vector.shape_cast %43 : vector<1x512xf32> to vector<1x1x512xf32>
      %45 = arith.addf %40, %44 : vector<1x1x512xf32>
      %c0_37 = arith.constant 0 : index
      %c0_38 = arith.constant 0 : index
      %c0_39 = arith.constant 0 : index
      %46 = vector.load %arg9[%c0_37, %c0_38, %c0_39] : memref<1x1x512xf32, #tpu.memory_space<vmem>>, vector<1x1x512xf32>
      tpu.vector_store %arg9[%c0_37, %c0_38, %c0_39], %45 {strides = array<i32>} : memref<1x1x512xf32, #tpu.memory_space<vmem>>, vector<1x1x512xf32>,
      %c0_40 = arith.constant 0 : index
      %c0_41 = arith.constant 0 : index
      %c0_42 = arith.constant 0 : index
      %47 = vector.load %arg10[%c0_40, %c0_41, %c0_42] : memref<1x1x512xf32, #tpu.memory_space<vmem>>, vector<1x1x512xf32>
      %48 = arith.mulf %18, %20 : vector<2x512xf32>
      %cst_43 = arith.constant dense<0.000000e+00> : vector<512xf32>
      %49 = vector.multi_reduction <add>, %48, %cst_43 [0] : vector<2x512xf32> to vector<512xf32>
      %50 = vector.shape_cast %49 : vector<512xf32> to vector<1x512xf32>
      %51 = vector.shape_cast %50 : vector<1x512xf32> to vector<1x1x512xf32>
      %52 = arith.addf %47, %51 : vector<1x1x512xf32>
      %c0_44 = arith.constant 0 : index
      %c0_45 = arith.constant 0 : index
      %c0_46 = arith.constant 0 : index
      %53 = vector.load %arg10[%c0_44, %c0_45, %c0_46] : memref<1x1x512xf32, #tpu.memory_space<vmem>>, vector<1x1x512xf32>
      tpu.vector_store %arg10[%c0_44, %c0_45, %c0_46], %52 {strides = array<i32>} : memref<1x1x512xf32, #tpu.memory_space<vmem>>, vector<1x1x512xf32>,
    } else {
    }
    %c2_i32_11 = arith.constant 2 : i32
    %14 = arith.cmpi slt, %10, %c2_i32_11 : i32
    %15 = arith.extui %14 : i1 to i32
    %c0_i32_12 = arith.constant 0 : i32
    %16 = arith.cmpi ne, %15, %c0_i32_12 : i32
    scf.if %16 {
      %17 = tpu.iota {dimensions = array<i32: 0>} : vector<2x512xi32>
      %18 = vector.broadcast %10 : i32 to vector<2x512xi32>
      %19 = arith.cmpi slt, %17, %18 : vector<2x512xi32>
      %20 = vector.broadcast %5 : vector<1x512xf32> to vector<2x512xf32>
      %21 = arith.subf %3, %20 : vector<2x512xf32>
      %cst = arith.constant 0.000000e+00 : f32
      %22 = vector.broadcast %cst : f32 to vector<2x512xf32>
      %23 = arith.select %19, %21, %22 : vector<2x512xi1>, vector<2x512xf32>
      %24 = vector.broadcast %6 : vector<1x512xf32> to vector<2x512xf32>
      %25 = arith.subf %4, %24 : vector<2x512xf32>
      %cst_13 = arith.constant 0.000000e+00 : f32
      %26 = vector.broadcast %cst_13 : f32 to vector<2x512xf32>
      %27 = arith.select %19, %25, %26 : vector<2x512xi1>, vector<2x512xf32>
      %c0_14 = arith.constant 0 : index
      %c0_15 = arith.constant 0 : index
      %c0_16 = arith.constant 0 : index
      %28 = vector.load %arg6[%c0_14, %c0_15, %c0_16] : memref<1x1x512xf32, #tpu.memory_space<vmem>>, vector<1x1x512xf32>
      %cst_17 = arith.constant dense<0.000000e+00> : vector<512xf32>
      %29 = vector.multi_reduction <add>, %23, %cst_17 [0] : vector<2x512xf32> to vector<512xf32>
      %30 = vector.shape_cast %29 : vector<512xf32> to vector<1x512xf32>
      %31 = vector.shape_cast %30 : vector<1x512xf32> to vector<1x1x512xf32>
      %32 = arith.addf %28, %31 : vector<1x1x512xf32>
      %c0_18 = arith.constant 0 : index
      %c0_19 = arith.constant 0 : index
      %c0_20 = arith.constant 0 : index
      %33 = vector.load %arg6[%c0_18, %c0_19, %c0_20] : memref<1x1x512xf32, #tpu.memory_space<vmem>>, vector<1x1x512xf32>
      tpu.vector_store %arg6[%c0_18, %c0_19, %c0_20], %32 {strides = array<i32>} : memref<1x1x512xf32, #tpu.memory_space<vmem>>, vector<1x1x512xf32>,
      %c0_21 = arith.constant 0 : index
      %c0_22 = arith.constant 0 : index
      %c0_23 = arith.constant 0 : index
      %34 = vector.load %arg7[%c0_21, %c0_22, %c0_23] : memref<1x1x512xf32, #tpu.memory_space<vmem>>, vector<1x1x512xf32>
      %cst_24 = arith.constant dense<0.000000e+00> : vector<512xf32>
      %35 = vector.multi_reduction <add>, %27, %cst_24 [0] : vector<2x512xf32> to vector<512xf32>
      %36 = vector.shape_cast %35 : vector<512xf32> to vector<1x512xf32>
      %37 = vector.shape_cast %36 : vector<1x512xf32> to vector<1x1x512xf32>
      %38 = arith.addf %34, %37 : vector<1x1x512xf32>
      %c0_25 = arith.constant 0 : index
      %c0_26 = arith.constant 0 : index
      %c0_27 = arith.constant 0 : index
      %39 = vector.load %arg7[%c0_25, %c0_26, %c0_27] : memref<1x1x512xf32, #tpu.memory_space<vmem>>, vector<1x1x512xf32>
      tpu.vector_store %arg7[%c0_25, %c0_26, %c0_27], %38 {strides = array<i32>} : memref<1x1x512xf32, #tpu.memory_space<vmem>>, vector<1x1x512xf32>,
      %c0_28 = arith.constant 0 : index
      %c0_29 = arith.constant 0 : index
      %c0_30 = arith.constant 0 : index
      %40 = vector.load %arg8[%c0_28, %c0_29, %c0_30] : memref<1x1x512xf32, #tpu.memory_space<vmem>>, vector<1x1x512xf32>
      %41 = arith.mulf %23, %23 : vector<2x512xf32>
      %cst_31 = arith.constant dense<0.000000e+00> : vector<512xf32>
      %42 = vector.multi_reduction <add>, %41, %cst_31 [0] : vector<2x512xf32> to vector<512xf32>
      %43 = vector.shape_cast %42 : vector<512xf32> to vector<1x512xf32>
      %44 = vector.shape_cast %43 : vector<1x512xf32> to vector<1x1x512xf32>
      %45 = arith.addf %40, %44 : vector<1x1x512xf32>
      %c0_32 = arith.constant 0 : index
      %c0_33 = arith.constant 0 : index
      %c0_34 = arith.constant 0 : index
      %46 = vector.load %arg8[%c0_32, %c0_33, %c0_34] : memref<1x1x512xf32, #tpu.memory_space<vmem>>, vector<1x1x512xf32>
      tpu.vector_store %arg8[%c0_32, %c0_33, %c0_34], %45 {strides = array<i32>} : memref<1x1x512xf32, #tpu.memory_space<vmem>>, vector<1x1x512xf32>,
      %c0_35 = arith.constant 0 : index
      %c0_36 = arith.constant 0 : index
      %c0_37 = arith.constant 0 : index
      %47 = vector.load %arg9[%c0_35, %c0_36, %c0_37] : memref<1x1x512xf32, #tpu.memory_space<vmem>>, vector<1x1x512xf32>
      %48 = arith.mulf %27, %27 : vector<2x512xf32>
      %cst_38 = arith.constant dense<0.000000e+00> : vector<512xf32>
      %49 = vector.multi_reduction <add>, %48, %cst_38 [0] : vector<2x512xf32> to vector<512xf32>
      %50 = vector.shape_cast %49 : vector<512xf32> to vector<1x512xf32>
      %51 = vector.shape_cast %50 : vector<1x512xf32> to vector<1x1x512xf32>
      %52 = arith.addf %47, %51 : vector<1x1x512xf32>
      %c0_39 = arith.constant 0 : index
      %c0_40 = arith.constant 0 : index
      %c0_41 = arith.constant 0 : index
      %53 = vector.load %arg9[%c0_39, %c0_40, %c0_41] : memref<1x1x512xf32, #tpu.memory_space<vmem>>, vector<1x1x512xf32>
      tpu.vector_store %arg9[%c0_39, %c0_40, %c0_41], %52 {strides = array<i32>} : memref<1x1x512xf32, #tpu.memory_space<vmem>>, vector<1x1x512xf32>,
      %c0_42 = arith.constant 0 : index
      %c0_43 = arith.constant 0 : index
      %c0_44 = arith.constant 0 : index
      %54 = vector.load %arg10[%c0_42, %c0_43, %c0_44] : memref<1x1x512xf32, #tpu.memory_space<vmem>>, vector<1x1x512xf32>
      %55 = arith.mulf %23, %27 : vector<2x512xf32>
      %cst_45 = arith.constant dense<0.000000e+00> : vector<512xf32>
      %56 = vector.multi_reduction <add>, %55, %cst_45 [0] : vector<2x512xf32> to vector<512xf32>
      %57 = vector.shape_cast %56 : vector<512xf32> to vector<1x512xf32>
      %58 = vector.shape_cast %57 : vector<1x512xf32> to vector<1x1x512xf32>
      %59 = arith.addf %54, %58 : vector<1x1x512xf32>
      %c0_46 = arith.constant 0 : index
      %c0_47 = arith.constant 0 : index
      %c0_48 = arith.constant 0 : index
      %60 = vector.load %arg10[%c0_46, %c0_47, %c0_48] : memref<1x1x512xf32, #tpu.memory_space<vmem>>, vector<1x1x512xf32>
      tpu.vector_store %arg10[%c0_46, %c0_47, %c0_48], %59 {strides = array<i32>} : memref<1x1x512xf32, #tpu.memory_space<vmem>>, vector<1x1x512xf32>,
    } else {
    }
    return
  }
  func.func @transform_0(%arg0: i32, %arg1: i32) -> (i32, i32) {
    %c1_i32 = arith.constant 1 : i32
    %0 = arith.muli %arg0, %c1_i32 : i32
    %1 = arith.addi %0, %arg1 : i32
    %c0_i32 = arith.constant 0 : i32
    %2 = arith.minsi %1, %c0_i32 : i32
    %c0_i32_0 = arith.constant 0 : i32
    %c0_i32_1 = arith.constant 0 : i32
    return %2, %c0_i32_0 : i32, i32
  }
  func.func @transform_1(%arg0: i32, %arg1: i32) -> (i32, i32) {
    %c1_i32 = arith.constant 1 : i32
    %0 = arith.muli %arg0, %c1_i32 : i32
    %1 = arith.addi %0, %arg1 : i32
    %c0_i32 = arith.constant 0 : i32
    %2 = arith.minsi %1, %c0_i32 : i32
    %c0_i32_0 = arith.constant 0 : i32
    %c0_i32_1 = arith.constant 0 : i32
    return %2, %c0_i32_0 : i32, i32
  }
  func.func @transform_2(%arg0: i32, %arg1: i32) -> (i32, i32) {
    %c0_i32 = arith.constant 0 : i32
    %c0_i32_0 = arith.constant 0 : i32
    %c0_i32_1 = arith.constant 0 : i32
    return %c0_i32, %c0_i32_0 : i32, i32
  }
  func.func @transform_3(%arg0: i32, %arg1: i32) -> (i32, i32) {
    %c0_i32 = arith.constant 0 : i32
    %c0_i32_0 = arith.constant 0 : i32
    %c0_i32_1 = arith.constant 0 : i32
    return %c0_i32, %c0_i32_0 : i32, i32
  }
  func.func @transform_4(%arg0: i32, %arg1: i32) -> (i32, i32, i32) {
    %c0_i32 = arith.constant 0 : i32
    %c0_i32_0 = arith.constant 0 : i32
    %c0_i32_1 = arith.constant 0 : i32
    return %arg0, %c0_i32, %c0_i32_0 : i32, i32, i32
  }
  func.func @transform_5(%arg0: i32, %arg1: i32) -> (i32, i32, i32) {
    %c0_i32 = arith.constant 0 : i32
    %c0_i32_0 = arith.constant 0 : i32
    %c0_i32_1 = arith.constant 0 : i32
    return %arg0, %c0_i32, %c0_i32_0 : i32, i32, i32
  }
  func.func @transform_6(%arg0: i32, %arg1: i32) -> (i32, i32, i32) {
    %c0_i32 = arith.constant 0 : i32
    %c0_i32_0 = arith.constant 0 : i32
    %c0_i32_1 = arith.constant 0 : i32
    return %arg0, %c0_i32, %c0_i32_0 : i32, i32, i32
  }
  func.func @transform_7(%arg0: i32, %arg1: i32) -> (i32, i32, i32) {
    %c0_i32 = arith.constant 0 : i32
    %c0_i32_0 = arith.constant 0 : i32
    %c0_i32_1 = arith.constant 0 : i32
    return %arg0, %c0_i32, %c0_i32_0 : i32, i32, i32
  }
  func.func @transform_8(%arg0: i32, %arg1: i32) -> (i32, i32, i32) {
    %c0_i32 = arith.constant 0 : i32
    %c0_i32_0 = arith.constant 0 : i32
    %c0_i32_1 = arith.constant 0 : i32
    return %arg0, %c0_i32, %c0_i32_0 : i32, i32, i32
  }
}

</mosaic_0001>

<bundles_post_ra>
// kernel: tpu_custom_call.1
= control target key start
LH: loop header
LB: loop body
LE: loop exit
PB: predicated region body
PF: predicated region fallthrough
CT: control target
= control target key end

     0   :  { %14 = vsyncpa [#allocation3], 0  ;;  %s1483_s0 = inlined_call_operand.hbm [shape: f32[2,512], index: 0, kind: input, shape index: {}]   ;;  %s1484_s1 = inlined_call_operand.hbm [shape: f32[2,512], index: 1, kind: input, shape index: {}]   ;;  %s1485_s2 = inlined_call_operand.hbm [shape: f32[1,512], index: 2, kind: input, shape index: {}]   ;;  %s1486_s3 = inlined_call_operand.vmem [shape: f32[1,512], index: 3, kind: input, shape index: {}]   ;;  %s1487_s4 = inlined_call_operand.hbm [shape: f32[1,1,512], index: 4, kind: output, shape index: {0}]   ;;  %s1488_s5 = inlined_call_operand.hbm [shape: f32[1,1,512], index: 5, kind: output, shape index: {1}]   ;;  %s1489_s6 = inlined_call_operand.hbm [shape: f32[1,1,512], index: 6, kind: output, shape index: {2}]   ;;  %s1490_s7 = inlined_call_operand.hbm [shape: f32[1,1,512], index: 7, kind: output, shape index: {3}]   ;;  %s1491_s8 = inlined_call_operand.hbm [shape: f32[1,1,512], index: 8, kind: output, shape index: {4}]  }
   0x1   :  { %15 = vsyncpa [#allocation6], 0 }
   0x2   :  { %16 = vsyncpa [#allocation4], 0 }
   0x3   :  { %17 = vsyncpa [#allocation10], 0 }
   0x4   :  { %18 = vsyncpa [#allocation13], 0  ;;  %s1296_s27 = smov [#allocation5]   ;;  %s1297_s29 = smov [#allocation2]  }
   0x5   :  { %s47_s28 = sshll.u32 %s1296_s27, 4  ;;  %s31_s30 = sshll.u32 %s1297_s29, 4  ;;  %s48_s28 = int_to_ptr.vmem [resolvable:$true] %s47_s28  ;;  %s32_s30 = int_to_ptr.vmem [resolvable:$true] %s31_s30 }
   0x6   :  { %s1134_s9 = scalar_lea.vmem %s48_s28, 128  ;;  %p1139_p1 = scmp.lt.s32.totalorder %s48_s28, %s48_s28 }
   0x7   :  { %p1135_p0 = scmp.ne.s32.totalorder %s48_s28, %s1134_s9  ;;  %p1140_p2 = scmp.lt.s32.totalorder %s1134_s9, %s1134_s9 }
   0x9   :  { %p1141_p3 = por %p1140_p2, %p1139_p1 }
   0xb   :  { %p1142_p4 = pnand %p1141_p3, %p1135_p0 }
   0xd   :  { %1145 = shalt.err (!%p1142_p4)
}
   0xe   :  { %50 = dma.hbm_to_vmem [thread:$0]  %s1484_s1, 128, %s48_s28, [#allocation6]  }
   0xf   :  { %s1154_s12 = scalar_lea.vmem %s32_s30, 128  ;;  %p1159_p6 = scmp.lt.s32.totalorder %s32_s30, %s32_s30 }
  0x10   :  { %p1155_p5 = scmp.ne.s32.totalorder %s32_s30, %s1154_s12  ;;  %p1160_p7 = scmp.lt.s32.totalorder %s1154_s12, %s1154_s12 }
  0x12   :  { %p1161_p8 = por %p1160_p7, %p1159_p6 }
  0x14   :  { %p1162_p9 = pnand %p1161_p8, %p1155_p5 }
  0x16   :  { %1165 = shalt.err (!%p1162_p9)
}
  0x17   :  { %34 = dma.hbm_to_vmem [thread:$0]  %s1483_s0, 128, %s32_s30, [#allocation3]  }
  0x18   :  { %s1298_s15 = smov [#allocation7]  }
  0x19   :  { %s57_s16 = sshll.u32 %s1298_s15, 4  ;;  %s58_s16 = int_to_ptr.vmem [resolvable:$true] %s57_s16 }
  0x1a   :  { %s1174_s17 = scalar_lea.vmem %s58_s16, 64  ;;  %p1179_p11 = scmp.lt.s32.totalorder %s58_s16, %s58_s16 }
  0x1b   :  { %p1175_p10 = scmp.ne.s32.totalorder %s58_s16, %s1174_s17  ;;  %p1180_p12 = scmp.lt.s32.totalorder %s1174_s17, %s1174_s17 }
  0x1d   :  { %p1181_p13 = por %p1180_p12, %p1179_p11 }
  0x1f   :  { %p1182_p0 = pnand %p1181_p13, %p1175_p10 }
  0x21   :  { %1185 = shalt.err (!%p1182_p0)
}
  0x22   :  { %60 = dma.hbm_to_vmem [thread:$0]  %s1485_s2, 64, %s58_s16, [#allocation6]  }
  0x23   :  { %1286 = dma.done.wait [#allocation3], 128  }
  0x24   :  { %1287 = vsyncadd [#allocation3], 4294967168 }
  0x25   :  { %1288 = dma.done.wait [#allocation6], 192  }
  0x26   :  { %1289 = vsyncadd [#allocation6], 4294967104  ;;  %v82_v0 = vlaneseq  ;;  %v1299_v1 = vmov 1983009808   ;;  %v1300_v5 = vmov 0.0   ;;  %v92_v30 = vld [vmem:[#allocation5] sm:$0xff] }
  0x27   :  { %v122_v2 = vunpack.c.l.s4 %v1299_v1  ;;  %v94_v12 = vld [vmem:[%s1486_s3] sm:$0xf]  ;;  %v93_v17 = vld [vmem:[#allocation7] sm:$0xf]  ;;  %v1301_v22 = vmov 1966171168  }
  0x28   :  { %vm1361_vm0 = vcmp.lt.s32.totalorder %v82_v0, 512  ;;  %v104_v4 = vshrl.u32 %v82_v0, 7  ;;  %v233_v23 = vunpack.c.l.s4 %v1301_v22  ;;  %v91_v35 = vld [vmem:[#allocation2] sm:$0xff]  ;;  %vm197_vm1 = vcmask 1041408   ;;  %s1302_s3 = smov [#allocation9]   ;;  %s1303_s20 = smov [#allocation12]  }
  0x29   :  { %87 = vst.msk [vmem:[#allocation9] sm:$0xf] %vm1361_vm0, %v1300_v5  ;;  %v123_v6 = vunpack.c.0.s8 %v122_v2  ;;  %86 = vst.msk [vmem:[#allocation8] sm:$0xf] %vm1361_vm0, %v1300_v5  ;;  %s1057_s19 = sshll.u32 %s1302_s3, 4  ;;  %s1077_s21 = sshll.u32 %s1303_s20, 4  ;;  %s1058_s19 = int_to_ptr.vmem [resolvable:$true] %s1057_s19  ;;  %s1432_s21 = int_to_ptr.vmem [resolvable:$true] %s1077_s21 }
  0x2a   :  { %88 = vst.msk [vmem:[#allocation11] sm:$0xf] %vm1361_vm0, %v1300_v5  ;;  %89 = vst.msk [vmem:[#allocation12] sm:$0xf] %vm1361_vm0, %v1300_v5  ;;  %v105_v7 = vsub.s32 0, %v104_v4  ;;  %v109_v8 = vsub.s32 1, %v104_v4  ;;  %v234_v33 = vunpack.c.0.s8 %v233_v23  ;;  %p1191_p2 = scmp.lt.s32.totalorder %s1058_s19, %s1058_s19 }
  0x2b   :  { %90 = vst.msk [vmem:[#allocation14] sm:$0xf] %vm1361_vm0, %v1300_v5  ;;  %v113_v9 = vsub.s32 2, %v104_v4  ;;  %v117_v10 = vsub.s32 3, %v104_v4  ;;  %v1375_v11 = vsub.s32 %v123_v6, %v104_v4  ;;  %s1186_s22 = scalar_lea.vmem %s1058_s19, 64 }
  0x2c   :  { %v142_v13 = vrot.slane %v94_v12, %v105_v7  ;;  %v146_v14 = vrot.slane %v94_v12, %v109_v8  ;;  %v106_v18 = vrot.slane %v93_v17, %v105_v7  ;;  %v110_v19 = vrot.slane %v93_v17, %v109_v8  ;;  %p1187_p1 = scmp.ne.s32.totalorder %s1058_s19, %s1186_s22  ;;  %p1192_p3 = scmp.lt.s32.totalorder %s1186_s22, %s1186_s22 }
  0x2d   :  { %v150_v15 = vrot.slane %v94_v12, %v113_v9  ;;  %v154_v16 = vrot.slane %v94_v12, %v117_v10  ;;  %v114_v20 = vrot.slane %v93_v17, %v113_v9  ;;  %v118_v21 = vrot.slane %v93_v17, %v117_v10 }
  0x2e   :  { %v155_v24 = vcombine.low %v142_v13, %v146_v14  ;;  %v119_v26 = vcombine.low %v106_v18, %v110_v19  ;;  %v1384_v39 = vsub.s32 %v234_v33, %v104_v4  ;;  %p1193_p4 = por %p1192_p3, %p1191_p2 }
  0x2f   :  { %v156_v25 = vcombine.low %v150_v15, %v154_v16  ;;  %v120_v27 = vcombine.low %v114_v20, %v118_v21 }
  0x30   :  { %v163_v28 = vrot.slane %v155_v24, %v1375_v11  ;;  %v127_v31 = vrot.slane %v119_v26, %v1375_v11  ;;  %p1194_p5 = pnand %p1193_p4, %p1187_p1 }
  0x31   :  { %v170_v29 = vrot.slane %v156_v25, %v1375_v11  ;;  %v134_v32 = vrot.slane %v120_v27, %v1375_v11 }
  0x33   :  { %v171_v34 = vcombine.low %v163_v28, %v170_v29  ;;  %v135_v36 = vcombine.low %v127_v31, %v134_v32 }
  0x35   :  { %v173_v37 = vsub.f32 %v92_v30, %v171_v34  ;;  %v137_v38 = vsub.f32 %v91_v35, %v135_v36 }
  0x37   :  { %v263_v40 = vcombine.high %v173_v37, %v173_v37  ;;  %v270_v41 = vrot.slane %v173_v37, %v1375_v11  ;;  %v427_v42 = vmul.f32 %v173_v37, %v173_v37  ;;  %v176_v43 = vcombine.high %v137_v38, %v137_v38 }
  0x38   :  { %v1388_v44 = vrot.slane %v137_v38, %v1375_v11  ;;  %v1390_v45 = vmul.f32 %v137_v38, %v137_v38  ;;  %v1392_v46 = vmul.f32 %v173_v37, %v137_v38 }
  0x39   :  { %v277_v47 = vrot.slane %v263_v40, %v1375_v11  ;;  %v278_v48 = vcombine.high %v270_v41, %v270_v41  ;;  %v284_v49 = vsel %vm197_vm1, %v270_v41, 0.0  ;;  %v429_v50 = vcombine.high %v427_v42, %v427_v42 }
  0x3a   :  { %v285_v51 = vrot.slane %v284_v49, 4  ;;  %v436_v52 = vrot.slane %v427_v42, %v1375_v11  ;;  %v1398_v53 = vrot.slane %v176_v43, %v1375_v11  ;;  %v191_v54 = vcombine.high %v1388_v44, %v1388_v44 }
  0x3b   :  { %v279_v55 = vcombine.high %v277_v47, %v277_v47  ;;  %v291_v56 = vsel %vm197_vm1, %v278_v48, 0.0  ;;  %v298_v57 = vsel %vm197_vm1, %v277_v47, 0.0  ;;  %v443_v58 = vrot.slane %v429_v50, %v1375_v11 }
  0x3c   :  { %v286_v59 = vadd.f32 %v285_v51, %v284_v49  ;;  %v292_v60 = vrot.slane %v291_v56, 4  ;;  %v299_v61 = vrot.slane %v298_v57, 4  ;;  %v444_v62 = vcombine.high %v436_v52, %v436_v52 }
  0x3d   :  { %v305_v63 = vsel %vm197_vm1, %v279_v55, 0.0  ;;  %v445_v0 = vcombine.high %v443_v58, %v443_v58  ;;  %v450_v1 = vsel %vm197_vm1, %v436_v52, 0.0  ;;  %v464_v2 = vsel %vm197_vm1, %v443_v58, 0.0 }
  0x3e   :  { %v287_v4 = vrot.slane %v286_v59, 2  ;;  %v293_v5 = vadd.f32 %v292_v60, %v291_v56  ;;  %v300_v6 = vadd.f32 %v299_v61, %v298_v57  ;;  %v306_v7 = vrot.slane %v305_v63, 4 }
  0x3f   :  { %v451_v8 = vrot.slane %v450_v1, 4  ;;  %v457_v9 = vsel %vm197_vm1, %v444_v62, 0.0  ;;  %v465_v10 = vrot.slane %v464_v2, 4  ;;  %v471_v12 = vsel %vm197_vm1, %v445_v0, 0.0 }
  0x40   :  { %v288_v13 = vadd.f32 %v287_v4, %v286_v59  ;;  %v294_v14 = vrot.slane %v293_v5, 2  ;;  %v301_v15 = vrot.slane %v300_v6, 2  ;;  %v307_v16 = vadd.f32 %v306_v7, %v305_v63 }
  0x41   :  { %v452_v17 = vadd.f32 %v451_v8, %v450_v1  ;;  %v458_v18 = vrot.slane %v457_v9, 4  ;;  %v466_v19 = vadd.f32 %v465_v10, %v464_v2  ;;  %v472_v20 = vrot.slane %v471_v12, 4 }
  0x42   :  { %v289_v21 = vrot.slane %v288_v13, 1  ;;  %v295_v22 = vadd.f32 %v294_v14, %v293_v5  ;;  %v302_v23 = vadd.f32 %v301_v15, %v300_v6  ;;  %v308_v24 = vrot.slane %v307_v16, 2  ;;  %v261_v15 = vld [vmem:[#allocation9] sm:$0xf] }
  0x43   :  { %v453_v25 = vrot.slane %v452_v17, 2  ;;  %v459_v26 = vadd.f32 %v458_v18, %v457_v9  ;;  %v467_v27 = vrot.slane %v466_v19, 2  ;;  %v473_v28 = vadd.f32 %v472_v20, %v471_v12 }
  0x44   :  { %v290_v29 = vadd.f32 %v289_v21, %v288_v13  ;;  %v296_v30 = vrot.slane %v295_v22, 1  ;;  %v303_v31 = vrot.slane %v302_v23, 1  ;;  %v309_v32 = vadd.f32 %v308_v24, %v307_v16 }
  0x45   :  { %v454_v33 = vadd.f32 %v453_v25, %v452_v17  ;;  %v460_v34 = vrot.slane %v459_v26, 2  ;;  %v468_v35 = vadd.f32 %v467_v27, %v466_v19  ;;  %v474_v36 = vrot.slane %v473_v28, 2 }
  0x46   :  { %v297_v37 = vadd.f32 %v296_v30, %v295_v22  ;;  %v304_v38 = vadd.f32 %v303_v31, %v302_v23  ;;  %v310_v40 = vrot.slane %v309_v32, 1  ;;  %v192_v41 = vcombine.high %v1398_v53, %v1398_v53 }
  0x47   :  { %v455_v42 = vrot.slane %v454_v33, 1  ;;  %v461_v43 = vadd.f32 %v460_v34, %v459_v26  ;;  %v469_v47 = vrot.slane %v468_v35, 1  ;;  %v475_v48 = vadd.f32 %v474_v36, %v473_v28  ;;  %v426_v28 = vld [vmem:[#allocation12] sm:$0xf] }
  0x48   :  { %v311_v49 = vadd.f32 %v310_v40, %v309_v32  ;;  %v316_v50 = vcombine.low %v290_v29, %v297_v37  ;;  %v198_v51 = vsel %vm197_vm1, %v1388_v44, 0.0  ;;  %v205_v52 = vsel %vm197_vm1, %v191_v54, 0.0 }
  0x49   :  { %v456_v55 = vadd.f32 %v455_v42, %v454_v33  ;;  %v462_v56 = vrot.slane %v461_v43, 1  ;;  %v470_v57 = vadd.f32 %v469_v47, %v468_v35  ;;  %v476_v58 = vrot.slane %v475_v48, 1 }
  0x4a   :  { %v317_v59 = vcombine.low %v304_v38, %v311_v49  ;;  %v324_v60 = vrot.slane %v316_v50, %v1384_v39  ;;  %v199_v61 = vrot.slane %v198_v51, 4  ;;  %v206_v62 = vrot.slane %v205_v52, 4 }
  0x4b   :  { %v463_v63 = vadd.f32 %v462_v56, %v461_v43  ;;  %v477_v0 = vadd.f32 %v476_v58, %v475_v48  ;;  %v212_v1 = vsel %vm197_vm1, %v1398_v53, 0.0  ;;  %v219_v2 = vsel %vm197_vm1, %v192_v41, 0.0 }
  0x4c   :  { %v331_v44 = vrot.slane %v317_v59, %v1384_v39  ;;  %v200_v4 = vadd.f32 %v199_v61, %v198_v51  ;;  %v207_v54 = vadd.f32 %v206_v62, %v205_v52  ;;  %v213_v5 = vrot.slane %v212_v1, 4 }
  0x4d   :  { %v482_v6 = vcombine.low %v456_v55, %v463_v63  ;;  %v483_v7 = vcombine.low %v470_v57, %v477_v0  ;;  %v220_v8 = vrot.slane %v219_v2, 4  ;;  %v346_v9 = vcombine.high %v1390_v45, %v1390_v45 }
  0x4e   :  { %v332_v10 = vcombine.low %v324_v60, %v331_v44  ;;  %v201_v12 = vrot.slane %v200_v4, 2  ;;  %v208_v13 = vrot.slane %v207_v54, 2  ;;  %v214_v14 = vadd.f32 %v213_v5, %v212_v1 }
  0x4f   :  { %v490_v53 = vrot.slane %v482_v6, %v1384_v39  ;;  %v497_v16 = vrot.slane %v483_v7, %v1384_v39  ;;  %v221_v17 = vadd.f32 %v220_v8, %v219_v2  ;;  %v353_v18 = vrot.slane %v1390_v45, %v1375_v11 }
  0x50   :  { %v339_v19 = vrot.slane %v332_v10, %v1384_v39  ;;  %v202_v20 = vadd.f32 %v201_v12, %v200_v4  ;;  %v209_v21 = vadd.f32 %v208_v13, %v207_v54  ;;  %v215_v22 = vrot.slane %v214_v14, 2 }
  0x51   :  { %v498_v23 = vcombine.low %v490_v53, %v497_v16  ;;  %v222_v24 = vrot.slane %v221_v17, 2  ;;  %v360_v25 = vrot.slane %v346_v9, %v1375_v11  ;;  %v361_v26 = vcombine.high %v353_v18, %v353_v18 }
  0x52   :  { %v341_v27 = vadd.f32 %v339_v19, %v261_v15  ;;  %v203_v29 = vrot.slane %v202_v20, 1  ;;  %v210_v30 = vrot.slane %v209_v21, 1  ;;  %v216_v31 = vadd.f32 %v215_v22, %v214_v14 }
  0x53   :  { %v505_v45 = vrot.slane %v498_v23, %v1384_v39  ;;  %v223_v32 = vadd.f32 %v222_v24, %v221_v17  ;;  %v362_v33 = vcombine.high %v360_v25, %v360_v25  ;;  %v367_v34 = vsel %vm197_vm1, %v353_v18, 0.0 }
  0x54   :  { %342 = vst.msk [vmem:[#allocation9] sm:$0xf] %vm1361_vm0, %v341_v27  ;;  %v204_v35 = vadd.f32 %v203_v29, %v202_v20  ;;  %v211_v36 = vadd.f32 %v210_v30, %v209_v21  ;;  %v217_v37 = vrot.slane %v216_v31, 1  ;;  %v368_v38 = vrot.slane %v367_v34, 4 }
  0x55   :  { %v507_v40 = vadd.f32 %v505_v45, %v426_v28  ;;  %v224_v41 = vrot.slane %v223_v32, 1  ;;  %v374_v42 = vsel %vm197_vm1, %v361_v26, 0.0  ;;  %v381_v43 = vsel %vm197_vm1, %v360_v25, 0.0 }
  0x56   :  { %1197 = shalt.err (!%p1194_p5)
}
  0x57   :  { %1060 = dma.vmem_to_hbm [thread:$0]  %s1058_s19, 64, %s1488_s5, [#allocation10]   ;;  %v218_v47 = vadd.f32 %v217_v37, %v216_v31  ;;  %v230_v48 = vcombine.low %v204_v35, %v211_v36  ;;  %v369_v49 = vadd.f32 %v368_v38, %v367_v34  ;;  %v375_v50 = vrot.slane %v374_v42, 4  ;;  %508 = vst.msk [vmem:[#allocation12] sm:$0xf] %vm1361_vm0, %v507_v40 }
  0x58   :  { %v225_v51 = vadd.f32 %v224_v41, %v223_v32  ;;  %v382_v52 = vrot.slane %v381_v43, 4  ;;  %v388_v55 = vsel %vm197_vm1, %v362_v33, 0.0  ;;  %v512_v56 = vcombine.high %v1392_v46, %v1392_v46  ;;  %s1206_s5 = scalar_lea.vmem %s1432_s21, 64  ;;  %p1211_p7 = scmp.lt.s32.totalorder %s1432_s21, %s1432_s21 }
  0x59   :  { %v238_v57 = vrot.slane %v230_v48, %v1384_v39  ;;  %v370_v58 = vrot.slane %v369_v49, 2  ;;  %v376_v59 = vadd.f32 %v375_v50, %v374_v42  ;;  %v389_v60 = vrot.slane %v388_v55, 4  ;;  %p1207_p6 = scmp.ne.s32.totalorder %s1432_s21, %s1206_s5  ;;  %p1212_p8 = scmp.lt.s32.totalorder %s1206_s5, %s1206_s5 }
  0x5b   :  { %p1213_p9 = por %p1212_p8, %p1211_p7 }
  0x5d   :  { %p1214_p10 = pnand %p1213_p9, %p1207_p6 }
  0x5f   :  { %1217 = shalt.err (!%p1214_p10)
}
  0x60   :  { %1080 = dma.vmem_to_hbm [thread:$0]  %s1432_s21, 64, %s1490_s7, [#allocation13]   ;;  %v231_v61 = vcombine.low %v218_v47, %v225_v51  ;;  %v383_v62 = vadd.f32 %v382_v52, %v381_v43  ;;  %v519_v63 = vrot.slane %v1392_v46, %v1375_v11  ;;  %v526_v0 = vrot.slane %v512_v56, %v1375_v11  ;;  %v174_v15 = vld [vmem:[#allocation8] sm:$0xf] }
  0x61   :  { %v371_v1 = vadd.f32 %v370_v58, %v369_v49  ;;  %v377_v2 = vrot.slane %v376_v59, 2  ;;  %v390_v44 = vadd.f32 %v389_v60, %v388_v55  ;;  %s1304_s7 = smov [#allocation8]  }
  0x62   :  { %v245_v4 = vrot.slane %v231_v61, %v1384_v39  ;;  %v384_v54 = vrot.slane %v383_v62, 2  ;;  %v527_v5 = vcombine.high %v519_v63, %v519_v63  ;;  %v528_v6 = vcombine.high %v526_v0, %v526_v0  ;;  %s1047_s27 = sshll.u32 %s1304_s7, 4  ;;  %s1048_s27 = int_to_ptr.vmem [resolvable:$true] %s1047_s27 }
  0x63   :  { %v372_v7 = vrot.slane %v371_v1, 1  ;;  %v378_v8 = vadd.f32 %v377_v2, %v376_v59  ;;  %v391_v9 = vrot.slane %v390_v44, 2  ;;  %v533_v10 = vsel %vm197_vm1, %v519_v63, 0.0  ;;  %s1226_s28 = scalar_lea.vmem %s1048_s27, 64  ;;  %p1231_p12 = scmp.lt.s32.totalorder %s1048_s27, %s1048_s27 }
  0x64   :  { %v246_v12 = vcombine.low %v238_v57, %v245_v4  ;;  %v385_v13 = vadd.f32 %v384_v54, %v383_v62  ;;  %v534_v14 = vrot.slane %v533_v10, 4  ;;  %v540_v46 = vsel %vm197_vm1, %v527_v5, 0.0  ;;  %p1227_p11 = scmp.ne.s32.totalorder %s1048_s27, %s1226_s28  ;;  %p1232_p13 = scmp.lt.s32.totalorder %s1226_s28, %s1226_s28 }
  0x65   :  { %v373_v11 = vadd.f32 %v372_v7, %v371_v1  ;;  %v379_v53 = vrot.slane %v378_v8, 1  ;;  %v392_v16 = vadd.f32 %v391_v9, %v390_v44  ;;  %v541_v17 = vrot.slane %v540_v46, 4 }
  0x66   :  { %v253_v18 = vrot.slane %v246_v12, %v1384_v39  ;;  %v386_v19 = vrot.slane %v385_v13, 1  ;;  %v535_v20 = vadd.f32 %v534_v14, %v533_v10  ;;  %v547_v21 = vsel %vm197_vm1, %v526_v0, 0.0  ;;  %p1233_p0 = por %p1232_p13, %p1231_p12 }
  0x67   :  { %v380_v22 = vadd.f32 %v379_v53, %v378_v8  ;;  %v393_v23 = vrot.slane %v392_v16, 1  ;;  %v542_v24 = vadd.f32 %v541_v17, %v540_v46  ;;  %v548_v25 = vrot.slane %v547_v21, 4 }
  0x68   :  { %v255_v26 = vadd.f32 %v253_v18, %v174_v15  ;;  %v387_v27 = vadd.f32 %v386_v19, %v385_v13  ;;  %v536_v28 = vrot.slane %v535_v20, 2  ;;  %v554_v29 = vsel %vm197_vm1, %v528_v6, 0.0  ;;  %p1234_p1 = pnand %p1233_p0, %p1227_p11 }
  0x69   :  { %v394_v30 = vadd.f32 %v393_v23, %v392_v16  ;;  %v399_v31 = vcombine.low %v373_v11, %v380_v22  ;;  %v543_v45 = vrot.slane %v542_v24, 2  ;;  %v549_v32 = vadd.f32 %v548_v25, %v547_v21 }
  0x6a   :  { %260 = vst.msk [vmem:[#allocation8] sm:$0xf] %vm1361_vm0, %v255_v26  ;;  %v537_v33 = vadd.f32 %v536_v28, %v535_v20  ;;  %v555_v34 = vrot.slane %v554_v29, 4 }
  0x6b   :  { %v400_v35 = vcombine.low %v387_v27, %v394_v30  ;;  %v407_v36 = vrot.slane %v399_v31, %v1384_v39  ;;  %v544_v37 = vadd.f32 %v543_v45, %v542_v24  ;;  %v550_v38 = vrot.slane %v549_v32, 2 }
  0x6c   :  { %1237 = shalt.err (!%p1234_p1)
}
  0x6d   :  { %1050 = dma.vmem_to_hbm [thread:$0]  %s1048_s27, 64, %s1487_s4, [#allocation4]   ;;  %v538_v40 = vrot.slane %v537_v33, 1  ;;  %v556_v41 = vadd.f32 %v555_v34, %v554_v29  ;;  %v414_v42 = vrot.slane %v400_v35, %v1384_v39  ;;  %v545_v43 = vrot.slane %v544_v37, 1  ;;  %v343_v55 = vld [vmem:[#allocation11] sm:$0xf] }
  0x6e   :  { %v551_v47 = vadd.f32 %v550_v38, %v549_v32  ;;  %s1305_s9 = smov [#allocation11]  }
  0x6f   :  { %v539_v48 = vadd.f32 %v538_v40, %v537_v33  ;;  %v557_v49 = vrot.slane %v556_v41, 2  ;;  %v415_v50 = vcombine.low %v407_v36, %v414_v42  ;;  %v546_v51 = vadd.f32 %v545_v43, %v544_v37  ;;  %s1067_s10 = sshll.u32 %s1305_s9, 4  ;;  %s1068_s10 = int_to_ptr.vmem [resolvable:$true] %s1067_s10 }
  0x70   :  { %v552_v52 = vrot.slane %v551_v47, 1  ;;  %s1246_s4 = scalar_lea.vmem %s1068_s10, 64  ;;  %p1251_p3 = scmp.lt.s32.totalorder %s1068_s10, %s1068_s10 }
  0x71   :  { %v558_v56 = vadd.f32 %v557_v49, %v556_v41  ;;  %v422_v57 = vrot.slane %v415_v50, %v1384_v39  ;;  %v565_v60 = vcombine.low %v539_v48, %v546_v51  ;;  %p1247_p2 = scmp.ne.s32.totalorder %s1068_s10, %s1246_s4  ;;  %p1252_p4 = scmp.lt.s32.totalorder %s1246_s4, %s1246_s4 }
  0x72   :  { %v553_v58 = vadd.f32 %v552_v52, %v551_v47 }
  0x73   :  { %v559_v59 = vrot.slane %v558_v56, 1  ;;  %v424_v61 = vadd.f32 %v422_v57, %v343_v55  ;;  %v573_v0 = vrot.slane %v565_v60, %v1384_v39  ;;  %p1253_p5 = por %p1252_p4, %p1251_p3 }
  0x75   :  { %v560_v62 = vadd.f32 %v559_v59, %v558_v56  ;;  %425 = vst.msk [vmem:[#allocation11] sm:$0xf] %vm1361_vm0, %v424_v61  ;;  %p1254_p6 = pnand %p1253_p5, %p1247_p2 }
  0x77   :  { %v566_v63 = vcombine.low %v553_v58, %v560_v62 }
  0x78   :  { %1257 = shalt.err (!%p1254_p6)
}
  0x79   :  { %1070 = dma.vmem_to_hbm [thread:$0]  %s1068_s10, 64, %s1489_s6, [#allocation10]   ;;  %v580_v1 = vrot.slane %v566_v63, %v1384_v39  ;;  %v509_v44 = vld [vmem:[#allocation14] sm:$0xf] }
  0x7a   :  { %s1306_s13 = smov [#allocation14]  }
  0x7b   :  { %v581_v2 = vcombine.low %v573_v0, %v580_v1  ;;  %s1087_s14 = sshll.u32 %s1306_s13, 4  ;;  %s1088_s14 = int_to_ptr.vmem [resolvable:$true] %s1087_s14 }
  0x7c   :  { %s1266_s15 = scalar_lea.vmem %s1088_s14, 64  ;;  %p1271_p8 = scmp.lt.s32.totalorder %s1088_s14, %s1088_s14 }
  0x7d   :  { %v588_v4 = vrot.slane %v581_v2, %v1384_v39  ;;  %p1267_p7 = scmp.ne.s32.totalorder %s1088_s14, %s1266_s15  ;;  %p1272_p9 = scmp.lt.s32.totalorder %s1266_s15, %s1266_s15 }
  0x7f   :  { %v590_v54 = vadd.f32 %v588_v4, %v509_v44  ;;  %p1273_p10 = por %p1272_p9, %p1271_p8 }
  0x81   :  { %591 = vst.msk [vmem:[#allocation14] sm:$0xf] %vm1361_vm0, %v590_v54  ;;  %p1274_p11 = pnand %p1273_p10, %p1267_p7 }
  0x83   :  { %1277 = shalt.err (!%p1274_p11)
}
  0x84   :  { %1090 = dma.vmem_to_hbm [thread:$0]  %s1088_s14, 64, %s1491_s8, [#allocation13]  }
  0x85   :  { %1290 = dma.done.wait [#allocation4], 64  }
  0x86   :  { %1291 = vsyncadd [#allocation4], 4294967232 }
  0x87   :  { %1292 = dma.done.wait [#allocation10], 128  }
  0x88   :  { %1293 = vsyncadd [#allocation10], 4294967168 }
  0x89   :  { %1294 = dma.done.wait [#allocation13], 128  }
  0x8a   :  { %1295 = vsyncadd [#allocation13], 4294967168 }
  0x8b   :  { %1106 = vsyncpa [#allocation3], 1 }
  0x8c   :  { %1107 = vsyncpa [#allocation6], 1 }
  0x8d   :  { %1108 = vsyncpa [#allocation4], 1 }
  0x8e   :  { %1109 = vsyncpa [#allocation10], 1 }
  0x8f   :  { %1110 = vsyncpa [#allocation13], 1 }

</bundles_post_ra>
